<compile_context>
chip_gen: v7x
topology: tpu7x:2x2x1
jax: 0.10.0
libtpu: 0.0.40
codegen_flags: <defaults>
</compile_context>

<pallas_src>
import jax
import jax.numpy as jnp
from jax.experimental import pallas as pl
from jax.experimental.pallas import tpu as pltpu


def _copy_kernel(src_ref, dst_ref):
    # Pure mem-bound copy: one tile per grid step.
    dst_ref[...] = src_ref[...]


def _round_up(x: int, m: int) -> int:
    return (x + m - 1) // m * m


def _lane_dense_width(n_total: int, n_out: int, cap: int = 2048) -> int:
    """Largest multiple of 128 (<= cap) dividing both the flat table size and
    the flat output size, or 0 if none exists."""
    best = 0
    lane = 128
    while lane <= cap:
        if n_total % lane == 0 and n_out % lane == 0:
            best = lane
        lane += 128
    return best


def learnable_positional_embedding(weight: jax.Array, x: jax.Array,
                                   *, seq_dim: int = 1) -> jax.Array:
    """weight: (1, max_len, d_model); x: (batch, seq, d_model).
    Only x's static sequence length is used (matching the PyTorch forward)."""
    _, max_len, d_model = weight.shape
    seq_len = x.shape[seq_dim]
    assert 0 < seq_len <= max_len
    dtype = weight.dtype
    itemsize = jnp.dtype(dtype).itemsize

    n_total = max_len * d_model
    n_out = seq_len * d_model
    lane = _lane_dense_width(n_total, n_out)

    # Per-buffer tile budget; with input+output double-buffering roughly 4x
    # this is live in VMEM -> well under the 32 MiB scoped default (v6e/v7x).
    tile_budget_bytes = 4 * 1024 * 1024

    if lane > 0:
        # ---- Lane-dense path -------------------------------------------------
        # View the contiguous table as (rows, lane); the first out_rows rows
        # are exactly weight[:, :seq_len, :] flattened.
        src = weight.reshape(n_total // lane, lane)
        out_rows = n_out // lane

        rows_cap = max(8, (tile_budget_bytes // (lane * itemsize)) // 8 * 8)
        tile_rows = min(_round_up(out_rows, 8), rows_cap)

        grid = (pl.cdiv(out_rows, tile_rows),)
        flat = pl.pallas_call(
            _copy_kernel,
            out_shape=jax.ShapeDtypeStruct((out_rows, lane), dtype),
            grid_spec=pltpu.PrefetchScalarGridSpec(
                num_scalar_prefetch=0,
                grid=grid,
                in_specs=[pl.BlockSpec((tile_rows, lane), lambda i: (i, 0))],
                out_specs=pl.BlockSpec((tile_rows, lane), lambda i: (i, 0)),
            ),
            compiler_params=pltpu.CompilerParams(
                dimension_semantics=("parallel",),
            ),
        )(src)
        return flat.reshape(1, seq_len, d_model)

    # ---- Fallback path (flat sizes not 128-divisible) -------------------------
    # Keep (seq, d_model) layout: d_model equals the full last array dim so the
    # BlockSpec is legal for any d_model; row tile rounded up to a sublane
    # multiple of 8 and the partial edge block is masked by Pallas.
    src = weight.reshape(max_len, d_model)
    rows_cap = max(8, (tile_budget_bytes // (max(d_model, 1) * itemsize)) // 8 * 8)
    tile_rows = min(_round_up(seq_len, 8), rows_cap)
    grid = (pl.cdiv(seq_len, tile_rows),)
    out = pl.pallas_call(
        _copy_kernel,
        out_shape=jax.ShapeDtypeStruct((seq_len, d_model), dtype),
        grid_spec=pltpu.PrefetchScalarGridSpec(
            num_scalar_prefetch=0,
            grid=grid,
            in_specs=[pl.BlockSpec((tile_rows, d_model), lambda i: (i, 0))],
            out_specs=pl.BlockSpec((tile_rows, d_model), lambda i: (i, 0)),
        ),
        compiler_params=pltpu.CompilerParams(
            dimension_semantics=("parallel",),
        ),
    )(src)
    return out.reshape(1, seq_len, d_model)


if __name__ == "__main__":
    d_model = 32
    max_len = 100
    batch, seq = 2, 8

    key = jax.random.PRNGKey(0)
    k_w, k_x = jax.random.split(key)

    # Deterministic parameter init mirroring: pe = 0.1 * randn(max_len, d_model)
    weight = 0.1 * jax.random.normal(k_w, (max_len, d_model), dtype=jnp.float32)
    weight = weight[None, :, :]  # (1, max_len, d_model)

    # Input x (only its static sequence length matters for the forward).
    x = jax.random.normal(k_x, (batch, seq, d_model), dtype=jnp.float32)

    out = learnable_positional_embedding(weight, x)
    out = jax.block_until_ready(out)

    # Reference check against plain-JAX slice semantics.
    ref = weight[:, :seq, :]
    assert out.shape == (1, seq, d_model)
    assert jnp.allclose(out, ref), "mismatch vs reference slice"

    # Also exercise a seq length that is not 128-friendly (fallback path with
    # rounded row tile + partial-block masking).
    seq2 = 13
    x2 = jax.random.normal(k_x, (batch, seq2, d_model), dtype=jnp.float32)
    out2 = jax.block_until_ready(learnable_positional_embedding(weight, x2))
    assert out2.shape == (1, seq2, d_model)
    assert jnp.allclose(out2, weight[:, :seq2, :]), "mismatch vs reference slice (seq=13)"

    print("KERNEL_OK")
</pallas_src>

<mosaic_0001>
module attributes {stable_mosaic.version = 11 : i64} {
  func.func @_copy_kernel(%arg0: i32, %arg1: memref<8x128xf32, #tpu.memory_space<vmem>>, %arg2: memref<8x128xf32, #tpu.memory_space<vmem>>) attributes {dimension_semantics = [#tpu.dimension_semantics<parallel>], iteration_bounds = array<i64: 1>, scalar_prefetch = 0 : i64, scratch_operands = 0 : i64, tpu.core_type = #tpu.core_type<tc>, window_params = [{transform_indices = @transform_0, window_bounds = array<i64: 8, 128>}, {transform_indices = @transform_1, window_bounds = array<i64: 8, 128>}]} {
    %c0 = arith.constant 0 : index
    %c0_0 = arith.constant 0 : index
    %0 = vector.load %arg1[%c0, %c0_0] : memref<8x128xf32, #tpu.memory_space<vmem>>, vector<8x128xf32>
    %c0_1 = arith.constant 0 : index
    %c0_2 = arith.constant 0 : index
    %1 = vector.load %arg2[%c0_1, %c0_2] : memref<8x128xf32, #tpu.memory_space<vmem>>, vector<8x128xf32>
    tpu.vector_store %arg2[%c0_1, %c0_2], %0 {strides = array<i32>} : memref<8x128xf32, #tpu.memory_space<vmem>>, vector<8x128xf32>,
    return
  }
  func.func @transform_0(%arg0: i32) -> (i32, i32) {
    %c0_i32 = arith.constant 0 : i32
    %c0_i32_0 = arith.constant 0 : i32
    return %arg0, %c0_i32 : i32, i32
  }
  func.func @transform_1(%arg0: i32) -> (i32, i32) {
    %c0_i32 = arith.constant 0 : i32
    %c0_i32_0 = arith.constant 0 : i32
    return %arg0, %c0_i32 : i32, i32
  }
}

</mosaic_0001>

<bundles_post_ra>
// kernel: tpu_custom_call.1
= control target key start
LH: loop header
LB: loop body
LE: loop exit
PB: predicated region body
PF: predicated region fallthrough
CT: control target
= control target key end

     0   :  { %6 = vsyncpa [#allocation3], 0  ;;  %s133_s0 = inlined_call_operand.hbm [shape: f32[25,128], index: 0, kind: input, shape index: {}]   ;;  %s134_s1 = inlined_call_operand.hbm [shape: f32[2,128], index: 1, kind: output, shape index: {}]  }
   0x1   :  { %7 = vsyncpa [#allocation4], 0  ;;  %s92_s6 = smov [#allocation2]   ;;  %s44_s10 = scalar_lea.hbm %s133_s0, 128 }
   0x2   :  { %s14_s7 = sshll.u32 %s92_s6, 4  ;;  %p45_p0 = scmp.ne.s32.totalorder %s133_s0, %s44_s10  ;;  %s15_s7 = int_to_ptr.vmem [resolvable:$true] %s14_s7 }
   0x3   :  { %s46_s15 = scalar_lea.hbm %s133_s0, 512  ;;  %p48_p2 = scmp.lt.u32.totalorder %s44_s10, %s133_s0 }
   0x4   :  { %p47_p1 = scmp.lt.u32.totalorder %s46_s15, %s44_s10 }
   0x6   :  { %p49_p3 = por %p48_p2, %p47_p1 }
   0x8   :  { %p50_p4 = pnand %p49_p3, %p45_p0 }
   0xa   :  { %53 = shalt.err (!%p50_p4)
}
   0xb   :  { %s54_s18 = scalar_lea.vmem %s15_s7, 128  ;;  %p59_p6 = scmp.lt.s32.totalorder %s15_s7, %s15_s7 }
   0xc   :  { %p55_p5 = scmp.ne.s32.totalorder %s15_s7, %s54_s18  ;;  %p60_p7 = scmp.lt.s32.totalorder %s54_s18, %s54_s18 }
   0xe   :  { %p61_p8 = por %p60_p7, %p59_p6 }
  0x10   :  { %p62_p9 = pnand %p61_p8, %p55_p5 }
  0x12   :  { %65 = shalt.err (!%p62_p9)
}
  0x13   :  { %17 = dma.hbm_to_vmem [thread:$0]  %s133_s0, 128, %s15_s7, [#allocation3]  }
  0x14   :  { %88 = dma.done.wait [#allocation3], 128  }
  0x15   :  { %89 = vsyncadd [#allocation3], 4294967168  ;;  %v21_v0 = vld [vmem:[#allocation2] sm:$0xff] }
  0x16   :  { %22 = vst [vmem:[#allocation5] sm:$0xff] %v21_v0 }
  0x17   :  { %27 = vsyncadd [#allocation4], 96  ;;  %s93_s21 = smov [#allocation5]  }
  0x18   :  { %s28_s22 = sshll.u32 %s93_s21, 4  ;;  %s29_s22 = int_to_ptr.vmem [resolvable:$true] %s28_s22 }
  0x19   :  { %s66_s23 = scalar_lea.vmem %s29_s22, 32  ;;  %s70_s24 = scalar_lea.vmem %s29_s22, 128 }
  0x1a   :  { %p67_p10 = scmp.ne.s32.totalorder %s29_s22, %s66_s23  ;;  %p71_p11 = scmp.lt.s32.totalorder %s29_s22, %s29_s22 }
  0x1b   :  { %p72_p12 = scmp.lt.s32.totalorder %s70_s24, %s66_s23 }
  0x1d   :  { %p73_p13 = por %p72_p12, %p71_p11 }
  0x1f   :  { %p74_p0 = pnand %p73_p13, %p67_p10 }
  0x21   :  { %77 = shalt.err (!%p74_p0)
}
  0x22   :  { %s78_s0 = scalar_lea.hbm %s134_s1, 32 }
  0x23   :  { %p79_p1 = scmp.ne.s32.totalorder %s134_s1, %s78_s0  ;;  %p82_p2 = scmp.lt.u32.totalorder %s78_s0, %s134_s1 }
  0x25   :  { %p84_p3 = pnand %p82_p2, %p79_p1 }
  0x27   :  { %87 = shalt.err (!%p84_p3)
}
  0x28   :  { %s94_s2 = smov 32   ;;  %s95_s3 = smov 2  }
  0x29   :  { %34 = dma.vmem_to_hbm [thread:$0]  %s29_s22, 32, %s134_s1, [#allocation4], %s94_s2, %s94_s2, %s95_s3  }
  0x2a   :  { %90 = dma.done.wait [#allocation4], 128  }
  0x2b   :  { %91 = vsyncadd [#allocation4], 4294967168 }
  0x2c   :  { %38 = vsyncpa [#allocation3], 1 }
  0x2d   :  { %39 = vsyncpa [#allocation4], 1 }

</bundles_post_ra>
